<compile_context>
chip_gen: v7x
topology: tpu7x:2x2x1
jax: 0.10.0
libtpu: 0.0.40
codegen_flags: <defaults>
</compile_context>

<pallas_src>
import math
import functools

import jax
import jax.numpy as jnp
from jax.experimental import pallas as pl
from jax.experimental.pallas import tpu as pltpu


def _layer_norm(v, w, b, eps=1e-5):
    mu = jnp.mean(v, axis=-1, keepdims=True)
    var = jnp.mean((v - mu) ** 2, axis=-1, keepdims=True)
    return (v - mu) * jax.lax.rsqrt(var + eps) * w + b


def gpt_kernel(x_ref, pos_ref,
               ln1w_ref, ln1b_ref, wattn_ref, battn_ref, wcp_ref, bcp_ref,
               ln2w_ref, ln2b_ref, wfc_ref, bfc_ref, wmp_ref, bmp_ref,
               lnfw_ref, lnfb_ref, whead_ref, bhead_ref,
               emb_ref, logits_ref, *, n_head, matmul_dtype):
    Bc, T, C = x_ref.shape
    hd = C // n_head
    N = Bc * T
    md = matmul_dtype

    def mm(a, w_ref, b_ref):
        # narrow dtype at the MXU, f32 accumulation; bias add in f32.
        return jnp.dot(a.astype(md), w_ref[...].astype(md),
                       preferred_element_type=jnp.float32) + b_ref[...]

    # x = drop(idx + pos_emb)      (dropout = identity, eval mode)
    x = (x_ref[...] + pos_ref[...][None]).reshape(N, C)            # (N, C)

    # ---- single transformer block (n_layer = 1, gpt-nano) ----
    x = jnp.maximum(x, 0.0)                                        # pre-block ReLU

    # --- attention: x = x + attn(ln_1(x)) ---
    xn = _layer_norm(x, ln1w_ref[...], ln1b_ref[...])
    qkv = jnp.maximum(mm(xn, wattn_ref, battn_ref), 0.0)           # relu(q|k|v), (N, 3C)

    scale = 1.0 / math.sqrt(hd)

    # Pure layout regrouping (PyTorch .view(B,T,H,hd).transpose(1,2)):
    # gather per-head lane slices into a fused (head*batch) leading dim.
    # All attention matmuls below are batched einsums -- no per-head MXU work.
    def head_major(t2d):                                           # (N, C) -> (H*Bc, T, hd)
        return jnp.concatenate(
            [t2d[:, h * hd:(h + 1) * hd].reshape(Bc, T, hd)
             for h in range(n_head)], axis=0)

    q = head_major(qkv[:, 0 * C:1 * C] * scale)   # fold 1/sqrt(hd) into q once
    k = head_major(qkv[:, 1 * C:2 * C])
    v = head_major(qkv[:, 2 * C:3 * C])

    row = jax.lax.broadcasted_iota(jnp.int32, (T, T), 0)
    col = jax.lax.broadcasted_iota(jnp.int32, (T, T), 1)
    causal = row >= col

    att = jnp.einsum('ztd,zsd->zts', q.astype(md), k.astype(md),
                     preferred_element_type=jnp.float32)           # (H*Bc, T, T)
    # masked_fill(-inf) followed by relu  ==  where(causal, relu(att), 0)
    # (valid only because this attention variant has no softmax); attn_dropout = id
    att = jnp.where(causal[None], jnp.maximum(att, 0.0), 0.0)
    y = jnp.einsum('zts,zsd->ztd', att.astype(md), v.astype(md),
                   preferred_element_type=jnp.float32)             # (H*Bc, T, hd)

    # inverse layout (PyTorch .transpose(1,2).contiguous().view(B,T,C))
    y = jnp.concatenate(
        [y[h * Bc:(h + 1) * Bc].reshape(N, hd) for h in range(n_head)], axis=-1)
    x = x + mm(y, wcp_ref, bcp_ref)                                # resid_dropout = id

    # --- MLP: x = x + c_proj(relu(c_fc(ln_2(x)))) ---
    xn = _layer_norm(x, ln2w_ref[...], ln2b_ref[...])
    hact = jnp.maximum(mm(xn, wfc_ref, bfc_ref), 0.0)
    x = x + mm(hact, wmp_ref, bmp_ref)

    # ---- final: relu -> ln_f -> relu -> mean over T -> lm_head -> relu ----
    x = jnp.maximum(x, 0.0)
    x = _layer_norm(x, lnfw_ref[...], lnfb_ref[...])
    x = jnp.maximum(x, 0.0)
    emb = jnp.mean(x.reshape(Bc, T, C), axis=1)                    # (Bc, C)
    emb_ref[...] = emb

    # lm_head batched over the whole block; M padded to 128 lanes wrapper-side
    logits_ref[...] = jnp.maximum(mm(emb, whead_ref, bhead_ref), 0.0)


def _default_batch_block(B, T, target_rows=256):
    # target_rows is a multiple of both 128 (v5e MXU rows) and 256 (v6e/v7x rows)
    bb = max(1, min(B, max(1, target_rows // max(T, 1))))
    # keep >= 2 'parallel' grid steps (v7x has 2 TensorCores) only when splitting
    # still leaves a dense row block per step
    if pl.cdiv(B, bb) < 2 and B > 1 and ((B + 1) // 2) * T >= target_rows:
        bb = (B + 1) // 2
    return bb


def gpt_forward(X, Y, params, *, n_head, loss1_coef=50.0,
                batch_block=None, matmul_dtype=jnp.bfloat16):
    """Mirror of GPT.forward: returns (emb, loss, mod_logits)."""
    B, T, V = X.shape
    C = params["wpe"].shape[1]
    assert V == C, "forward requires vocab_size == n_embd (idx + pos_emb broadcast)"
    assert C % n_head == 0
    M = params["w_head"].shape[1]

    # lane-dense logits: pad lm_head columns to a multiple of 128 (sliced off below).
    M_pad = ((M + 127) // 128) * 128
    w_head, b_head = params["w_head"], params["b_head"]
    if M_pad != M:
        w_head = jnp.pad(w_head, ((0, 0), (0, M_pad - M)))
        b_head = jnp.pad(b_head, ((0, 0), (0, M_pad - M)))

    # fold the batch into few grid steps: each step handles `batch_block` sequences
    if batch_block is None:
        batch_block = _default_batch_block(B, T)
    n_blocks = pl.cdiv(B, batch_block)
    B_pad = n_blocks * batch_block
    if B_pad != B:
        X = jnp.pad(X, ((0, B_pad - B), (0, 0), (0, 0)))

    pos_emb = params["wpe"][:T]                                    # (T, C)

    w2d = lambda shape: pl.BlockSpec(shape, lambda b: (0, 0))
    in_specs = [
        pl.BlockSpec((batch_block, T, V), lambda b: (b, 0, 0)),    # X
        w2d((T, C)),                                               # pos_emb
        w2d((1, C)), w2d((1, C)),                                  # ln_1 w, b
        w2d((C, 3 * C)), w2d((1, 3 * C)),                          # c_attn W^T, b
        w2d((C, C)), w2d((1, C)),                                  # attn c_proj W^T, b
        w2d((1, C)), w2d((1, C)),                                  # ln_2 w, b
        w2d((C, 2 * C)), w2d((1, 2 * C)),                          # mlp c_fc W^T, b
        w2d((2 * C, C)), w2d((1, C)),                              # mlp c_proj W^T, b
        w2d((1, C)), w2d((1, C)),                                  # ln_f w, b
        w2d((C, M_pad)), w2d((1, M_pad)),                          # lm_head W^T, b (padded)
    ]
    out_specs = (
        pl.BlockSpec((pl.Squeezed(), batch_block, C), lambda b: (b, 0, 0)),
        pl.BlockSpec((pl.Squeezed(), batch_block, M_pad), lambda b: (b, 0, 0)),
    )
    out_shape = (
        jax.ShapeDtypeStruct((n_blocks, batch_block, C), jnp.float32),
        jax.ShapeDtypeStruct((n_blocks, batch_block, M_pad), jnp.float32),
    )

    emb3, logits3 = pl.pallas_call(
        functools.partial(gpt_kernel, n_head=n_head, matmul_dtype=matmul_dtype),
        out_shape=out_shape,
        grid_spec=pltpu.PrefetchScalarGridSpec(
            num_scalar_prefetch=0,
            grid=(n_blocks,),
            in_specs=in_specs,
            out_specs=out_specs,
        ),
        compiler_params=pltpu.CompilerParams(
            dimension_semantics=("parallel",),
            vmem_limit_bytes=32 * 1024 * 1024,
        ),
    )(X, pos_emb,
      params["ln1_w"], params["ln1_b"], params["w_attn"], params["b_attn"],
      params["w_cproj"], params["b_cproj"],
      params["ln2_w"], params["ln2_b"], params["w_fc"], params["b_fc"],
      params["w_mproj"], params["b_mproj"],
      params["lnf_w"], params["lnf_b"], w_head, b_head)

    emb = emb3.reshape(B_pad, C)[:B]
    mod_logits = logits3.reshape(B_pad, M_pad)[:B, :M]

    # loss = conf.loss1 * sqrt(mse(mod_logits, Y))  (small scalar reduction: plain JAX glue)
    loss = loss1_coef * jnp.sqrt(jnp.mean((mod_logits - Y.astype(jnp.float32)) ** 2))
    return emb, loss, mod_logits


def init_params(key, *, block_size, n_embd, n_head, mod2_dim, n_layer=1):
    C = n_embd
    ks = jax.random.split(key, 8)
    std = 0.02
    proj_std = 0.02 / math.sqrt(2 * n_layer)   # special init for *.c_proj.weight

    def nrm(k, shape, s):
        return (s * jax.random.normal(k, shape)).astype(jnp.float32)

    params = {
        # embedding
        "wpe": nrm(ks[0], (block_size, C), std),
        # block 0
        "ln1_w": jnp.ones((1, C), jnp.float32),
        "ln1_b": jnp.zeros((1, C), jnp.float32),
        "w_attn": nrm(ks[1], (3 * C, C), std).T,          # -> (C, 3C)
        "b_attn": jnp.zeros((1, 3 * C), jnp.float32),
        "w_cproj": nrm(ks[2], (C, C), proj_std).T,        # -> (C, C)
        "b_cproj": jnp.zeros((1, C), jnp.float32),
        "ln2_w": jnp.ones((1, C), jnp.float32),
        "ln2_b": jnp.zeros((1, C), jnp.float32),
        "w_fc": nrm(ks[3], (2 * C, C), std).T,            # -> (C, 2C)
        "b_fc": jnp.zeros((1, 2 * C), jnp.float32),
        "w_mproj": nrm(ks[4], (C, 2 * C), proj_std).T,    # -> (2C, C)
        "b_mproj": jnp.zeros((1, C), jnp.float32),
        # final
        "lnf_w": jnp.ones((1, C), jnp.float32),
        "lnf_b": jnp.zeros((1, C), jnp.float32),
        "w_head": nrm(ks[5], (mod2_dim, C), std).T,       # -> (C, M)
        "b_head": jnp.zeros((1, mod2_dim), jnp.float32),
        # NOTE: self.pro (Linear(vocab_size, n_embd)) is defined in __init__ but
        # never used in the forward pass, so it is omitted here.
    }
    return params


if __name__ == "__main__":
    # Small shapes consistent with the module (gpt-nano: n_layer=1, n_head=config.h=2)
    B, T, C = 2, 8, 32          # batch, block_size/seq, n_embd (== vocab_size)
    n_head = 2
    mod2_dim = 16

    key = jax.random.PRNGKey(0)
    kx, ky, kp = jax.random.split(key, 3)

    X = jax.random.normal(kx, (B, T, C), dtype=jnp.float32)
    Y = jax.random.normal(ky, (B, mod2_dim), dtype=jnp.float32)
    params = init_params(kp, block_size=T, n_embd=C, n_head=n_head,
                         mod2_dim=mod2_dim, n_layer=1)

    emb, loss, mod_logits = gpt_forward(X, Y, params, n_head=n_head)
    jax.block_until_ready((emb, loss, mod_logits))

    assert emb.shape == (B, C)
    assert mod_logits.shape == (B, mod2_dim)
    assert loss.shape == ()
    print("KERNEL_OK")
</pallas_src>

<mosaic_0001>
module attributes {stable_mosaic.version = 11 : i64} {
  func.func @gpt_kernel(%arg0: i32, %arg1: memref<2x8x32xf32, #tpu.memory_space<vmem>>, %arg2: memref<8x32xf32, #tpu.memory_space<vmem>>, %arg3: memref<1x32xf32, #tpu.memory_space<vmem>>, %arg4: memref<1x32xf32, #tpu.memory_space<vmem>>, %arg5: memref<32x96xf32, #tpu.memory_space<vmem>>, %arg6: memref<1x96xf32, #tpu.memory_space<vmem>>, %arg7: memref<32x32xf32, #tpu.memory_space<vmem>>, %arg8: memref<1x32xf32, #tpu.memory_space<vmem>>, %arg9: memref<1x32xf32, #tpu.memory_space<vmem>>, %arg10: memref<1x32xf32, #tpu.memory_space<vmem>>, %arg11: memref<32x64xf32, #tpu.memory_space<vmem>>, %arg12: memref<1x64xf32, #tpu.memory_space<vmem>>, %arg13: memref<64x32xf32, #tpu.memory_space<vmem>>, %arg14: memref<1x32xf32, #tpu.memory_space<vmem>>, %arg15: memref<1x32xf32, #tpu.memory_space<vmem>>, %arg16: memref<1x32xf32, #tpu.memory_space<vmem>>, %arg17: memref<32x128xf32, #tpu.memory_space<vmem>>, %arg18: memref<1x128xf32, #tpu.memory_space<vmem>>, %arg19: memref<1x2x32xf32, #tpu.memory_space<vmem>>, %arg20: memref<1x2x128xf32, #tpu.memory_space<vmem>>) attributes {dimension_semantics = [#tpu.dimension_semantics<parallel>], iteration_bounds = array<i64: 1>, scalar_prefetch = 0 : i64, scratch_operands = 0 : i64, tpu.core_type = #tpu.core_type<tc>, window_params = [{transform_indices = @transform_0, window_bounds = array<i64: 2, 8, 32>}, {pipeline_mode = #tpu.pipeline_mode<synchronous>, transform_indices = @transform_1, window_bounds = array<i64: 8, 32>}, {pipeline_mode = #tpu.pipeline_mode<synchronous>, transform_indices = @transform_2, window_bounds = array<i64: 1, 32>}, {pipeline_mode = #tpu.pipeline_mode<synchronous>, transform_indices = @transform_3, window_bounds = array<i64: 1, 32>}, {pipeline_mode = #tpu.pipeline_mode<synchronous>, transform_indices = @transform_4, window_bounds = array<i64: 32, 96>}, {pipeline_mode = #tpu.pipeline_mode<synchronous>, transform_indices = @transform_5, window_bounds = array<i64: 1, 96>}, {pipeline_mode = #tpu.pipeline_mode<synchronous>, transform_indices = @transform_6, window_bounds = array<i64: 32, 32>}, {pipeline_mode = #tpu.pipeline_mode<synchronous>, transform_indices = @transform_7, window_bounds = array<i64: 1, 32>}, {pipeline_mode = #tpu.pipeline_mode<synchronous>, transform_indices = @transform_8, window_bounds = array<i64: 1, 32>}, {pipeline_mode = #tpu.pipeline_mode<synchronous>, transform_indices = @transform_9, window_bounds = array<i64: 1, 32>}, {pipeline_mode = #tpu.pipeline_mode<synchronous>, transform_indices = @transform_10, window_bounds = array<i64: 32, 64>}, {pipeline_mode = #tpu.pipeline_mode<synchronous>, transform_indices = @transform_11, window_bounds = array<i64: 1, 64>}, {pipeline_mode = #tpu.pipeline_mode<synchronous>, transform_indices = @transform_12, window_bounds = array<i64: 64, 32>}, {pipeline_mode = #tpu.pipeline_mode<synchronous>, transform_indices = @transform_13, window_bounds = array<i64: 1, 32>}, {pipeline_mode = #tpu.pipeline_mode<synchronous>, transform_indices = @transform_14, window_bounds = array<i64: 1, 32>}, {pipeline_mode = #tpu.pipeline_mode<synchronous>, transform_indices = @transform_15, window_bounds = array<i64: 1, 32>}, {pipeline_mode = #tpu.pipeline_mode<synchronous>, transform_indices = @transform_16, window_bounds = array<i64: 32, 128>}, {pipeline_mode = #tpu.pipeline_mode<synchronous>, transform_indices = @transform_17, window_bounds = array<i64: 1, 128>}, {transform_indices = @transform_18, window_bounds = array<i64: 1, 2, 32>}, {transform_indices = @transform_19, window_bounds = array<i64: 1, 2, 128>}]} {
    %c0 = arith.constant 0 : index
    %c0_0 = arith.constant 0 : index
    %c0_1 = arith.constant 0 : index
    %0 = vector.load %arg1[%c0, %c0_0, %c0_1] : memref<2x8x32xf32, #tpu.memory_space<vmem>>, vector<2x8x32xf32>
    %c0_2 = arith.constant 0 : index
    %c0_3 = arith.constant 0 : index
    %1 = vector.load %arg2[%c0_2, %c0_3] : memref<8x32xf32, #tpu.memory_space<vmem>>, vector<8x32xf32>
    %2 = vector.shape_cast %1 : vector<8x32xf32> to vector<1x8x32xf32>
    %3 = vector.broadcast %2 : vector<1x8x32xf32> to vector<2x8x32xf32>
    %4 = arith.addf %0, %3 : vector<2x8x32xf32>
    %5 = vector.shape_cast %4 : vector<2x8x32xf32> to vector<16x32xf32>
    %cst = arith.constant 0.000000e+00 : f32
    %6 = vector.broadcast %cst : f32 to vector<16x32xf32>
    %7 = arith.maximumf %5, %6 : vector<16x32xf32>
    %c0_4 = arith.constant 0 : index
    %c0_5 = arith.constant 0 : index
    %8 = vector.load %arg3[%c0_4, %c0_5] : memref<1x32xf32, #tpu.memory_space<vmem>>, vector<1x32xf32>
    %c0_6 = arith.constant 0 : index
    %c0_7 = arith.constant 0 : index
    %9 = vector.load %arg4[%c0_6, %c0_7] : memref<1x32xf32, #tpu.memory_space<vmem>>, vector<1x32xf32>
    %cst_8 = arith.constant dense<0.000000e+00> : vector<16xf32>
    %10 = vector.multi_reduction <add>, %7, %cst_8 [1] : vector<16x32xf32> to vector<16xf32>
    %11 = vector.shape_cast %10 : vector<16xf32> to vector<16x1xf32>
    %cst_9 = arith.constant 3.200000e+01 : f32
    %12 = vector.broadcast %cst_9 : f32 to vector<16x1xf32>
    %13 = arith.divf %11, %12 : vector<16x1xf32>
    %14 = vector.broadcast %13 : vector<16x1xf32> to vector<16x32xf32>
    %15 = arith.subf %7, %14 : vector<16x32xf32>
    %16 = arith.mulf %15, %15 : vector<16x32xf32>
    %cst_10 = arith.constant dense<0.000000e+00> : vector<16xf32>
    %17 = vector.multi_reduction <add>, %16, %cst_10 [1] : vector<16x32xf32> to vector<16xf32>
    %18 = vector.shape_cast %17 : vector<16xf32> to vector<16x1xf32>
    %cst_11 = arith.constant 3.200000e+01 : f32
    %19 = vector.broadcast %cst_11 : f32 to vector<16x1xf32>
    %20 = arith.divf %18, %19 : vector<16x1xf32>
    %21 = vector.broadcast %13 : vector<16x1xf32> to vector<16x32xf32>
    %22 = arith.subf %7, %21 : vector<16x32xf32>
    %cst_12 = arith.constant 9.99999974E-6 : f32
    %23 = vector.broadcast %cst_12 : f32 to vector<16x1xf32>
    %24 = arith.addf %20, %23 : vector<16x1xf32>
    %25 = math.rsqrt %24 : vector<16x1xf32>
    %26 = vector.broadcast %25 : vector<16x1xf32> to vector<16x32xf32>
    %27 = arith.mulf %22, %26 : vector<16x32xf32>
    %28 = vector.broadcast %8 : vector<1x32xf32> to vector<16x32xf32>
    %29 = arith.mulf %27, %28 : vector<16x32xf32>
    %30 = vector.broadcast %9 : vector<1x32xf32> to vector<16x32xf32>
    %31 = arith.addf %29, %30 : vector<16x32xf32>
    %32 = arith.truncf %31 : vector<16x32xf32> to vector<16x32xbf16>
    %c0_13 = arith.constant 0 : index
    %c0_14 = arith.constant 0 : index
    %33 = vector.load %arg5[%c0_13, %c0_14] : memref<32x96xf32, #tpu.memory_space<vmem>>, vector<32x96xf32>
    %34 = arith.truncf %33 : vector<32x96xf32> to vector<32x96xbf16>
    %cst_15 = arith.constant dense<0.000000e+00> : vector<16x96xf32>
    %35 = tpu.matmul %32, %34, %cst_15 {dimension_numbers = #tpu.dot_dimension_numbers<[1], [0], [0], [1], [0, 0, 1, 1], [], []>} : vector<16x32xbf16>, vector<32x96xbf16>, vector<16x96xf32> -> vector<16x96xf32>
    %c0_16 = arith.constant 0 : index
    %c0_17 = arith.constant 0 : index
    %36 = vector.load %arg6[%c0_16, %c0_17] : memref<1x96xf32, #tpu.memory_space<vmem>>, vector<1x96xf32>
    %37 = vector.broadcast %36 : vector<1x96xf32> to vector<16x96xf32>
    %38 = arith.addf %35, %37 : vector<16x96xf32>
    %cst_18 = arith.constant 0.000000e+00 : f32
    %39 = vector.broadcast %cst_18 : f32 to vector<16x96xf32>
    %40 = arith.maximumf %38, %39 : vector<16x96xf32>
    %41 = vector.extract_strided_slice %40 {offsets = [0, 0], sizes = [16, 32], strides = [1, 1]} : vector<16x96xf32> to vector<16x32xf32>
    %cst_19 = arith.constant 2.500000e-01 : f32
    %42 = vector.broadcast %cst_19 : f32 to vector<16x32xf32>
    %43 = arith.mulf %41, %42 : vector<16x32xf32>
    %44 = vector.extract_strided_slice %43 {offsets = [0, 0], sizes = [16, 16], strides = [1, 1]} : vector<16x32xf32> to vector<16x16xf32>
    %45 = vector.shape_cast %44 : vector<16x16xf32> to vector<2x8x16xf32>
    %46 = vector.extract_strided_slice %43 {offsets = [0, 16], sizes = [16, 16], strides = [1, 1]} : vector<16x32xf32> to vector<16x16xf32>
    %47 = vector.shape_cast %46 : vector<16x16xf32> to vector<2x8x16xf32>
    %48 = tpu.concatenate %45, %47 in 0 : vector<2x8x16xf32>, vector<2x8x16xf32> -> vector<4x8x16xf32>
    %49 = vector.extract_strided_slice %40 {offsets = [0, 32], sizes = [16, 32], strides = [1, 1]} : vector<16x96xf32> to vector<16x32xf32>
    %50 = vector.extract_strided_slice %49 {offsets = [0, 0], sizes = [16, 16], strides = [1, 1]} : vector<16x32xf32> to vector<16x16xf32>
    %51 = vector.shape_cast %50 : vector<16x16xf32> to vector<2x8x16xf32>
    %52 = vector.extract_strided_slice %49 {offsets = [0, 16], sizes = [16, 16], strides = [1, 1]} : vector<16x32xf32> to vector<16x16xf32>
    %53 = vector.shape_cast %52 : vector<16x16xf32> to vector<2x8x16xf32>
    %54 = tpu.concatenate %51, %53 in 0 : vector<2x8x16xf32>, vector<2x8x16xf32> -> vector<4x8x16xf32>
    %55 = vector.extract_strided_slice %40 {offsets = [0, 64], sizes = [16, 32], strides = [1, 1]} : vector<16x96xf32> to vector<16x32xf32>
    %56 = vector.extract_strided_slice %55 {offsets = [0, 0], sizes = [16, 16], strides = [1, 1]} : vector<16x32xf32> to vector<16x16xf32>
    %57 = vector.shape_cast %56 : vector<16x16xf32> to vector<2x8x16xf32>
    %58 = vector.extract_strided_slice %55 {offsets = [0, 16], sizes = [16, 16], strides = [1, 1]} : vector<16x32xf32> to vector<16x16xf32>
    %59 = vector.shape_cast %58 : vector<16x16xf32> to vector<2x8x16xf32>
    %60 = tpu.concatenate %57, %59 in 0 : vector<2x8x16xf32>, vector<2x8x16xf32> -> vector<4x8x16xf32>
    %61 = tpu.iota {dimensions = array<i32: 0>} : vector<8x8xi32>
    %62 = tpu.iota {dimensions = array<i32: 1>} : vector<8x8xi32>
    %63 = arith.cmpi sge, %61, %62 : vector<8x8xi32>
    %64 = arith.truncf %48 : vector<4x8x16xf32> to vector<4x8x16xbf16>
    %65 = arith.truncf %54 : vector<4x8x16xf32> to vector<4x8x16xbf16>
    "tpu.trace_start"() <{level = 10 : i32, message = "ztd,zsd->zts"}> : () -> ()
    %cst_20 = arith.constant dense<0.000000e+00> : vector<4x8x8xf32>
    %66 = tpu.matmul %64, %65, %cst_20 {dimension_numbers = #tpu.dot_dimension_numbers<[2], [2], [1], [1], [0, 0, 0, 1, 1, 1], [0], [0]>} : vector<4x8x16xbf16>, vector<4x8x16xbf16>, vector<4x8x8xf32> -> vector<4x8x8xf32>
    "tpu.trace_stop"() : () -> ()
    %67 = vector.shape_cast %63 : vector<8x8xi1> to vector<1x8x8xi1>
    %cst_21 = arith.constant 0.000000e+00 : f32
    %68 = vector.broadcast %cst_21 : f32 to vector<4x8x8xf32>
    %69 = arith.maximumf %66, %68 : vector<4x8x8xf32>
    %cst_22 = arith.constant 0.000000e+00 : f32
    %70 = vector.shape_cast %67 : vector<1x8x8xi1> to vector<1x8x8xi1>
    %71 = vector.broadcast %70 : vector<1x8x8xi1> to vector<4x8x8xi1>
    %72 = vector.broadcast %cst_22 : f32 to vector<4x8x8xf32>
    %73 = arith.select %71, %69, %72 : vector<4x8x8xi1>, vector<4x8x8xf32>
    %74 = arith.truncf %73 : vector<4x8x8xf32> to vector<4x8x8xbf16>
    %75 = arith.truncf %60 : vector<4x8x16xf32> to vector<4x8x16xbf16>
    "tpu.trace_start"() <{level = 10 : i32, message = "zts,zsd->ztd"}> : () -> ()
    %cst_23 = arith.constant dense<0.000000e+00> : vector<4x8x16xf32>
    %76 = tpu.matmul %74, %75, %cst_23 {dimension_numbers = #tpu.dot_dimension_numbers<[2], [1], [1], [2], [0, 0, 0, 1, 1, 2], [0], [0]>} : vector<4x8x8xbf16>, vector<4x8x16xbf16>, vector<4x8x16xf32> -> vector<4x8x16xf32>
    "tpu.trace_stop"() : () -> ()
    %77 = vector.extract_strided_slice %76 {offsets = [0, 0, 0], sizes = [2, 8, 16], strides = [1, 1, 1]} : vector<4x8x16xf32> to vector<2x8x16xf32>
    %78 = vector.shape_cast %77 : vector<2x8x16xf32> to vector<16x16xf32>
    %79 = vector.extract_strided_slice %76 {offsets = [2, 0, 0], sizes = [2, 8, 16], strides = [1, 1, 1]} : vector<4x8x16xf32> to vector<2x8x16xf32>
    %80 = vector.shape_cast %79 : vector<2x8x16xf32> to vector<16x16xf32>
    %81 = tpu.concatenate %78, %80 in 1 : vector<16x16xf32>, vector<16x16xf32> -> vector<16x32xf32>
    %82 = arith.truncf %81 : vector<16x32xf32> to vector<16x32xbf16>
    %c0_24 = arith.constant 0 : index
    %c0_25 = arith.constant 0 : index
    %83 = vector.load %arg7[%c0_24, %c0_25] : memref<32x32xf32, #tpu.memory_space<vmem>>, vector<32x32xf32>
    %84 = arith.truncf %83 : vector<32x32xf32> to vector<32x32xbf16>
    %cst_26 = arith.constant dense<0.000000e+00> : vector<16x32xf32>
    %85 = tpu.matmul %82, %84, %cst_26 {dimension_numbers = #tpu.dot_dimension_numbers<[1], [0], [0], [1], [0, 0, 1, 1], [], []>} : vector<16x32xbf16>, vector<32x32xbf16>, vector<16x32xf32> -> vector<16x32xf32>
    %c0_27 = arith.constant 0 : index
    %c0_28 = arith.constant 0 : index
    %86 = vector.load %arg8[%c0_27, %c0_28] : memref<1x32xf32, #tpu.memory_space<vmem>>, vector<1x32xf32>
    %87 = vector.broadcast %86 : vector<1x32xf32> to vector<16x32xf32>
    %88 = arith.addf %85, %87 : vector<16x32xf32>
    %89 = arith.addf %7, %88 : vector<16x32xf32>
    %c0_29 = arith.constant 0 : index
    %c0_30 = arith.constant 0 : index
    %90 = vector.load %arg9[%c0_29, %c0_30] : memref<1x32xf32, #tpu.memory_space<vmem>>, vector<1x32xf32>
    %c0_31 = arith.constant 0 : index
    %c0_32 = arith.constant 0 : index
    %91 = vector.load %arg10[%c0_31, %c0_32] : memref<1x32xf32, #tpu.memory_space<vmem>>, vector<1x32xf32>
    %cst_33 = arith.constant dense<0.000000e+00> : vector<16xf32>
    %92 = vector.multi_reduction <add>, %89, %cst_33 [1] : vector<16x32xf32> to vector<16xf32>
    %93 = vector.shape_cast %92 : vector<16xf32> to vector<16x1xf32>
    %cst_34 = arith.constant 3.200000e+01 : f32
    %94 = vector.broadcast %cst_34 : f32 to vector<16x1xf32>
    %95 = arith.divf %93, %94 : vector<16x1xf32>
    %96 = vector.broadcast %95 : vector<16x1xf32> to vector<16x32xf32>
    %97 = arith.subf %89, %96 : vector<16x32xf32>
    %98 = arith.mulf %97, %97 : vector<16x32xf32>
    %cst_35 = arith.constant dense<0.000000e+00> : vector<16xf32>
    %99 = vector.multi_reduction <add>, %98, %cst_35 [1] : vector<16x32xf32> to vector<16xf32>
    %100 = vector.shape_cast %99 : vector<16xf32> to vector<16x1xf32>
    %cst_36 = arith.constant 3.200000e+01 : f32
    %101 = vector.broadcast %cst_36 : f32 to vector<16x1xf32>
    %102 = arith.divf %100, %101 : vector<16x1xf32>
    %103 = vector.broadcast %95 : vector<16x1xf32> to vector<16x32xf32>
    %104 = arith.subf %89, %103 : vector<16x32xf32>
    %cst_37 = arith.constant 9.99999974E-6 : f32
    %105 = vector.broadcast %cst_37 : f32 to vector<16x1xf32>
    %106 = arith.addf %102, %105 : vector<16x1xf32>
    %107 = math.rsqrt %106 : vector<16x1xf32>
    %108 = vector.broadcast %107 : vector<16x1xf32> to vector<16x32xf32>
    %109 = arith.mulf %104, %108 : vector<16x32xf32>
    %110 = vector.broadcast %90 : vector<1x32xf32> to vector<16x32xf32>
    %111 = arith.mulf %109, %110 : vector<16x32xf32>
    %112 = vector.broadcast %91 : vector<1x32xf32> to vector<16x32xf32>
    %113 = arith.addf %111, %112 : vector<16x32xf32>
    %114 = arith.truncf %113 : vector<16x32xf32> to vector<16x32xbf16>
    %c0_38 = arith.constant 0 : index
    %c0_39 = arith.constant 0 : index
    %115 = vector.load %arg11[%c0_38, %c0_39] : memref<32x64xf32, #tpu.memory_space<vmem>>, vector<32x64xf32>
    %116 = arith.truncf %115 : vector<32x64xf32> to vector<32x64xbf16>
    %cst_40 = arith.constant dense<0.000000e+00> : vector<16x64xf32>
    %117 = tpu.matmul %114, %116, %cst_40 {dimension_numbers = #tpu.dot_dimension_numbers<[1], [0], [0], [1], [0, 0, 1, 1], [], []>} : vector<16x32xbf16>, vector<32x64xbf16>, vector<16x64xf32> -> vector<16x64xf32>
    %c0_41 = arith.constant 0 : index
    %c0_42 = arith.constant 0 : index
    %118 = vector.load %arg12[%c0_41, %c0_42] : memref<1x64xf32, #tpu.memory_space<vmem>>, vector<1x64xf32>
    %119 = vector.broadcast %118 : vector<1x64xf32> to vector<16x64xf32>
    %120 = arith.addf %117, %119 : vector<16x64xf32>
    %cst_43 = arith.constant 0.000000e+00 : f32
    %121 = vector.broadcast %cst_43 : f32 to vector<16x64xf32>
    %122 = arith.maximumf %120, %121 : vector<16x64xf32>
    %123 = arith.truncf %122 : vector<16x64xf32> to vector<16x64xbf16>
    %c0_44 = arith.constant 0 : index
    %c0_45 = arith.constant 0 : index
    %124 = vector.load %arg13[%c0_44, %c0_45] : memref<64x32xf32, #tpu.memory_space<vmem>>, vector<64x32xf32>
    %125 = arith.truncf %124 : vector<64x32xf32> to vector<64x32xbf16>
    %cst_46 = arith.constant dense<0.000000e+00> : vector<16x32xf32>
    %126 = tpu.matmul %123, %125, %cst_46 {dimension_numbers = #tpu.dot_dimension_numbers<[1], [0], [0], [1], [0, 0, 1, 1], [], []>} : vector<16x64xbf16>, vector<64x32xbf16>, vector<16x32xf32> -> vector<16x32xf32>
    %c0_47 = arith.constant 0 : index
    %c0_48 = arith.constant 0 : index
    %127 = vector.load %arg14[%c0_47, %c0_48] : memref<1x32xf32, #tpu.memory_space<vmem>>, vector<1x32xf32>
    %128 = vector.broadcast %127 : vector<1x32xf32> to vector<16x32xf32>
    %129 = arith.addf %126, %128 : vector<16x32xf32>
    %130 = arith.addf %89, %129 : vector<16x32xf32>
    %cst_49 = arith.constant 0.000000e+00 : f32
    %131 = vector.broadcast %cst_49 : f32 to vector<16x32xf32>
    %132 = arith.maximumf %130, %131 : vector<16x32xf32>
    %c0_50 = arith.constant 0 : index
    %c0_51 = arith.constant 0 : index
    %133 = vector.load %arg15[%c0_50, %c0_51] : memref<1x32xf32, #tpu.memory_space<vmem>>, vector<1x32xf32>
    %c0_52 = arith.constant 0 : index
    %c0_53 = arith.constant 0 : index
    %134 = vector.load %arg16[%c0_52, %c0_53] : memref<1x32xf32, #tpu.memory_space<vmem>>, vector<1x32xf32>
    %cst_54 = arith.constant dense<0.000000e+00> : vector<16xf32>
    %135 = vector.multi_reduction <add>, %132, %cst_54 [1] : vector<16x32xf32> to vector<16xf32>
    %136 = vector.shape_cast %135 : vector<16xf32> to vector<16x1xf32>
    %cst_55 = arith.constant 3.200000e+01 : f32
    %137 = vector.broadcast %cst_55 : f32 to vector<16x1xf32>
    %138 = arith.divf %136, %137 : vector<16x1xf32>
    %139 = vector.broadcast %138 : vector<16x1xf32> to vector<16x32xf32>
    %140 = arith.subf %132, %139 : vector<16x32xf32>
    %141 = arith.mulf %140, %140 : vector<16x32xf32>
    %cst_56 = arith.constant dense<0.000000e+00> : vector<16xf32>
    %142 = vector.multi_reduction <add>, %141, %cst_56 [1] : vector<16x32xf32> to vector<16xf32>
    %143 = vector.shape_cast %142 : vector<16xf32> to vector<16x1xf32>
    %cst_57 = arith.constant 3.200000e+01 : f32
    %144 = vector.broadcast %cst_57 : f32 to vector<16x1xf32>
    %145 = arith.divf %143, %144 : vector<16x1xf32>
    %146 = vector.broadcast %138 : vector<16x1xf32> to vector<16x32xf32>
    %147 = arith.subf %132, %146 : vector<16x32xf32>
    %cst_58 = arith.constant 9.99999974E-6 : f32
    %148 = vector.broadcast %cst_58 : f32 to vector<16x1xf32>
    %149 = arith.addf %145, %148 : vector<16x1xf32>
    %150 = math.rsqrt %149 : vector<16x1xf32>
    %151 = vector.broadcast %150 : vector<16x1xf32> to vector<16x32xf32>
    %152 = arith.mulf %147, %151 : vector<16x32xf32>
    %153 = vector.broadcast %133 : vector<1x32xf32> to vector<16x32xf32>
    %154 = arith.mulf %152, %153 : vector<16x32xf32>
    %155 = vector.broadcast %134 : vector<1x32xf32> to vector<16x32xf32>
    %156 = arith.addf %154, %155 : vector<16x32xf32>
    %cst_59 = arith.constant 0.000000e+00 : f32
    %157 = vector.broadcast %cst_59 : f32 to vector<16x32xf32>
    %158 = arith.maximumf %156, %157 : vector<16x32xf32>
    %159 = vector.shape_cast %158 : vector<16x32xf32> to vector<2x8x32xf32>
    %cst_60 = arith.constant dense<0.000000e+00> : vector<2x32xf32>
    %160 = vector.multi_reduction <add>, %159, %cst_60 [1] : vector<2x8x32xf32> to vector<2x32xf32>
    %cst_61 = arith.constant 8.000000e+00 : f32
    %161 = vector.broadcast %cst_61 : f32 to vector<2x32xf32>
    %162 = arith.divf %160, %161 : vector<2x32xf32>
    %c0_62 = arith.constant 0 : index
    %c0_63 = arith.constant 0 : index
    %c0_64 = arith.constant 0 : index
    %163 = vector.load %arg19[%c0_62, %c0_63, %c0_64] : memref<1x2x32xf32, #tpu.memory_space<vmem>>, vector<1x2x32xf32>
    %164 = vector.shape_cast %163 : vector<1x2x32xf32> to vector<2x32xf32>
    %165 = vector.shape_cast %162 : vector<2x32xf32> to vector<1x2x32xf32>
    tpu.vector_store %arg19[%c0_62, %c0_63, %c0_64], %165 {strides = array<i32>} : memref<1x2x32xf32, #tpu.memory_space<vmem>>, vector<1x2x32xf32>,
    %166 = arith.truncf %162 : vector<2x32xf32> to vector<2x32xbf16>
    %c0_65 = arith.constant 0 : index
    %c0_66 = arith.constant 0 : index
    %167 = vector.load %arg17[%c0_65, %c0_66] : memref<32x128xf32, #tpu.memory_space<vmem>>, vector<32x128xf32>
    %168 = arith.truncf %167 : vector<32x128xf32> to vector<32x128xbf16>
    %cst_67 = arith.constant dense<0.000000e+00> : vector<2x128xf32>
    %169 = tpu.matmul %166, %168, %cst_67 {dimension_numbers = #tpu.dot_dimension_numbers<[1], [0], [0], [1], [0, 0, 1, 1], [], []>} : vector<2x32xbf16>, vector<32x128xbf16>, vector<2x128xf32> -> vector<2x128xf32>
    %c0_68 = arith.constant 0 : index
    %c0_69 = arith.constant 0 : index
    %170 = vector.load %arg18[%c0_68, %c0_69] : memref<1x128xf32, #tpu.memory_space<vmem>>, vector<1x128xf32>
    %171 = vector.broadcast %170 : vector<1x128xf32> to vector<2x128xf32>
    %172 = arith.addf %169, %171 : vector<2x128xf32>
    %cst_70 = arith.constant 0.000000e+00 : f32
    %173 = vector.broadcast %cst_70 : f32 to vector<2x128xf32>
    %174 = arith.maximumf %172, %173 : vector<2x128xf32>
    %c0_71 = arith.constant 0 : index
    %c0_72 = arith.constant 0 : index
    %c0_73 = arith.constant 0 : index
    %175 = vector.load %arg20[%c0_71, %c0_72, %c0_73] : memref<1x2x128xf32, #tpu.memory_space<vmem>>, vector<1x2x128xf32>
    %176 = vector.shape_cast %175 : vector<1x2x128xf32> to vector<2x128xf32>
    %177 = vector.shape_cast %174 : vector<2x128xf32> to vector<1x2x128xf32>
    tpu.vector_store %arg20[%c0_71, %c0_72, %c0_73], %177 {strides = array<i32>} : memref<1x2x128xf32, #tpu.memory_space<vmem>>, vector<1x2x128xf32>,
    return
  }
  func.func @transform_0(%arg0: i32) -> (i32, i32, i32) {
    %c0_i32 = arith.constant 0 : i32
    %c0_i32_0 = arith.constant 0 : i32
    %c0_i32_1 = arith.constant 0 : i32
    return %arg0, %c0_i32, %c0_i32_0 : i32, i32, i32
  }
  func.func @transform_1(%arg0: i32) -> (i32, i32) {
    %c0_i32 = arith.constant 0 : i32
    %c0_i32_0 = arith.constant 0 : i32
    %c0_i32_1 = arith.constant 0 : i32
    return %c0_i32, %c0_i32_0 : i32, i32
  }
  func.func @transform_2(%arg0: i32) -> (i32, i32) {
    %c0_i32 = arith.constant 0 : i32
    %c0_i32_0 = arith.constant 0 : i32
    %c0_i32_1 = arith.constant 0 : i32
    return %c0_i32, %c0_i32_0 : i32, i32
  }
  func.func @transform_3(%arg0: i32) -> (i32, i32) {
    %c0_i32 = arith.constant 0 : i32
    %c0_i32_0 = arith.constant 0 : i32
    %c0_i32_1 = arith.constant 0 : i32
    return %c0_i32, %c0_i32_0 : i32, i32
  }
  func.func @transform_4(%arg0: i32) -> (i32, i32) {
    %c0_i32 = arith.constant 0 : i32
    %c0_i32_0 = arith.constant 0 : i32
    %c0_i32_1 = arith.constant 0 : i32
    return %c0_i32, %c0_i32_0 : i32, i32
  }
  func.func @transform_5(%arg0: i32) -> (i32, i32) {
    %c0_i32 = arith.constant 0 : i32
    %c0_i32_0 = arith.constant 0 : i32
    %c0_i32_1 = arith.constant 0 : i32
    return %c0_i32, %c0_i32_0 : i32, i32
  }
  func.func @transform_6(%arg0: i32) -> (i32, i32) {
    %c0_i32 = arith.constant 0 : i32
    %c0_i32_0 = arith.constant 0 : i32
    %c0_i32_1 = arith.constant 0 : i32
    return %c0_i32, %c0_i32_0 : i32, i32
  }
  func.func @transform_7(%arg0: i32) -> (i32, i32) {
    %c0_i32 = arith.constant 0 : i32
    %c0_i32_0 = arith.constant 0 : i32
    %c0_i32_1 = arith.constant 0 : i32
    return %c0_i32, %c0_i32_0 : i32, i32
  }
  func.func @transform_8(%arg0: i32) -> (i32, i32) {
    %c0_i32 = arith.constant 0 : i32
    %c0_i32_0 = arith.constant 0 : i32
    %c0_i32_1 = arith.constant 0 : i32
    return %c0_i32, %c0_i32_0 : i32, i32
  }
  func.func @transform_9(%arg0: i32) -> (i32, i32) {
    %c0_i32 = arith.constant 0 : i32
    %c0_i32_0 = arith.constant 0 : i32
    %c0_i32_1 = arith.constant 0 : i32
    return %c0_i32, %c0_i32_0 : i32, i32
  }
  func.func @transform_10(%arg0: i32) -> (i32, i32) {
    %c0_i32 = arith.constant 0 : i32
    %c0_i32_0 = arith.constant 0 : i32
    %c0_i32_1 = arith.constant 0 : i32
    return %c0_i32, %c0_i32_0 : i32, i32
  }
  func.func @transform_11(%arg0: i32) -> (i32, i32) {
    %c0_i32 = arith.constant 0 : i32
    %c0_i32_0 = arith.constant 0 : i32
    %c0_i32_1 = arith.constant 0 : i32
    return %c0_i32, %c0_i32_0 : i32, i32
  }
  func.func @transform_12(%arg0: i32) -> (i32, i32) {
    %c0_i32 = arith.constant 0 : i32
    %c0_i32_0 = arith.constant 0 : i32
    %c0_i32_1 = arith.constant 0 : i32
    return %c0_i32, %c0_i32_0 : i32, i32
  }
  func.func @transform_13(%arg0: i32) -> (i32, i32) {
    %c0_i32 = arith.constant 0 : i32
    %c0_i32_0 = arith.constant 0 : i32
    %c0_i32_1 = arith.constant 0 : i32
    return %c0_i32, %c0_i32_0 : i32, i32
  }
  func.func @transform_14(%arg0: i32) -> (i32, i32) {
    %c0_i32 = arith.constant 0 : i32
    %c0_i32_0 = arith.constant 0 : i32
    %c0_i32_1 = arith.constant 0 : i32
    return %c0_i32, %c0_i32_0 : i32, i32
  }
  func.func @transform_15(%arg0: i32) -> (i32, i32) {
    %c0_i32 = arith.constant 0 : i32
    %c0_i32_0 = arith.constant 0 : i32
    %c0_i32_1 = arith.constant 0 : i32
    return %c0_i32, %c0_i32_0 : i32, i32
  }
  func.func @transform_16(%arg0: i32) -> (i32, i32) {
    %c0_i32 = arith.constant 0 : i32
    %c0_i32_0 = arith.constant 0 : i32
    %c0_i32_1 = arith.constant 0 : i32
    return %c0_i32, %c0_i32_0 : i32, i32
  }
  func.func @transform_17(%arg0: i32) -> (i32, i32) {
    %c0_i32 = arith.constant 0 : i32
    %c0_i32_0 = arith.constant 0 : i32
    %c0_i32_1 = arith.constant 0 : i32
    return %c0_i32, %c0_i32_0 : i32, i32
  }
  func.func @transform_18(%arg0: i32) -> (i32, i32, i32) {
    %c0_i32 = arith.constant 0 : i32
    %c0_i32_0 = arith.constant 0 : i32
    %c0_i32_1 = arith.constant 0 : i32
    return %arg0, %c0_i32, %c0_i32_0 : i32, i32, i32
  }
  func.func @transform_19(%arg0: i32) -> (i32, i32, i32) {
    %c0_i32 = arith.constant 0 : i32
    %c0_i32_0 = arith.constant 0 : i32
    %c0_i32_1 = arith.constant 0 : i32
    return %arg0, %c0_i32, %c0_i32_0 : i32, i32, i32
  }
}

</mosaic_0001>

<bundles_post_ra>
// kernel: tpu_custom_call.1
= control target key start
LH: loop header
LB: loop body
LE: loop exit
PB: predicated region body
PF: predicated region fallthrough
CT: control target
= control target key end

     0   :  { %s1747_s0 = inlined_call_operand.hbm [shape: f32[2,8,32], index: 0, kind: input, shape index: {}]   ;;  %s1748_s1 = inlined_call_operand.hbm [shape: f32[8,32], index: 1, kind: input, shape index: {}]   ;;  %s1749_s2 = inlined_call_operand.vmem [shape: f32[1,32], index: 2, kind: input, shape index: {}]   ;;  %s1750_s3 = inlined_call_operand.vmem [shape: f32[1,32], index: 3, kind: input, shape index: {}]   ;;  %s1751_s4 = inlined_call_operand.vmem [shape: f32[32,96], index: 4, kind: input, shape index: {}]   ;;  %s1752_s5 = inlined_call_operand.vmem [shape: f32[1,96], index: 5, kind: input, shape index: {}]   ;;  %s1753_s6 = inlined_call_operand.vmem [shape: f32[32,32], index: 6, kind: input, shape index: {}]   ;;  %s1754_s7 = inlined_call_operand.vmem [shape: f32[1,32], index: 7, kind: input, shape index: {}]   ;;  %s1755_s8 = inlined_call_operand.vmem [shape: f32[1,32], index: 8, kind: input, shape index: {}]   ;;  %s1756_s9 = inlined_call_operand.vmem [shape: f32[1,32], index: 9, kind: input, shape index: {}]   ;;  %s1757_s10 = inlined_call_operand.vmem [shape: f32[32,64], index: 10, kind: input, shape index: {}]   ;;  %s1758_s11 = inlined_call_operand.vmem [shape: f32[1,64], index: 11, kind: input, shape index: {}]   ;;  %s1759_s12 = inlined_call_operand.vmem [shape: f32[64,32], index: 12, kind: input, shape index: {}]   ;;  %s1760_s13 = inlined_call_operand.vmem [shape: f32[1,32], index: 13, kind: input, shape index: {}]   ;;  %s1761_s14 = inlined_call_operand.vmem [shape: f32[1,32], index: 14, kind: input, shape index: {}]   ;;  %s1762_s15 = inlined_call_operand.vmem [shape: f32[1,32], index: 15, kind: input, shape index: {}]   ;;  %s1763_s16 = inlined_call_operand.hbm [shape: f32[32,128], index: 16, kind: input, shape index: {}]   ;;  %s1764_s17 = inlined_call_operand.vmem [shape: f32[1,128], index: 17, kind: input, shape index: {}]   ;;  %s1765_s18 = inlined_call_operand.hbm [shape: f32[1,2,32], index: 18, kind: output, shape index: {0}]   ;;  %s1766_s19 = inlined_call_operand.hbm [shape: f32[1,2,128], index: 19, kind: output, shape index: {1}]  }
   0x1   :  { %1770 = sst [smem:[#allocation15_spill]] %s1747_s0 }
   0x2   :  { %1771 = sst [smem:[#allocation16_spill]] %s1748_s1 }
   0x3   :  { %1772 = sst [smem:[#allocation17_spill]] %s1749_s2 }
   0x4   :  { %1773 = sst [smem:[#allocation18_spill]] %s1750_s3 }
   0x5   :  { %1774 = sst [smem:[#allocation19_spill]] %s1766_s19 }
   0x6   :  { %25 = vsyncpa [#allocation3], 0 }
   0x7   :  { %26 = vsyncpa [#allocation6], 0 }
   0x8   :  { %27 = vsyncpa [#allocation4], 0 }
   0x9   :  { %28 = vsyncpa [#allocation10], 0  ;;  %s1368_s0 = smov [#allocation5]   ;;  %s1369_s20 = smov [#allocation2]  }
   0xa   :  { %s47_s30 = sshll.u32 %s1368_s0, 4  ;;  %s34_s21 = sshll.u32 %s1369_s20, 4  ;;  %s48_s30 = int_to_ptr.vmem [resolvable:$true] %s47_s30  ;;  %s1481_s21 = int_to_ptr.vmem [resolvable:$true] %s34_s21 }
   0xb   :  { %s1775_s2 = sld [smem:[#allocation16_spill]] }
  0x11   :  { %s1250_s23 = scalar_lea.hbm %s1775_s2, 128 }
  0x12   :  { %p1251_p0 = scmp.ne.s32.totalorder %s1775_s2, %s1250_s23  ;;  %p1254_p1 = scmp.lt.u32.totalorder %s1250_s23, %s1775_s2 }
  0x14   :  { %p1256_p2 = pnand %p1254_p1, %p1251_p0 }
  0x16   :  { %1259 = shalt.err (!%p1256_p2)
}
  0x17   :  { %s1260_s27 = scalar_lea.vmem %s48_s30, 128  ;;  %p1265_p4 = scmp.lt.s32.totalorder %s48_s30, %s48_s30 }
  0x18   :  { %p1261_p3 = scmp.ne.s32.totalorder %s48_s30, %s1260_s27  ;;  %p1266_p5 = scmp.lt.s32.totalorder %s1260_s27, %s1260_s27 }
  0x1a   :  { %p1267_p6 = por %p1266_p5, %p1265_p4 }
  0x1c   :  { %p1268_p7 = pnand %p1267_p6, %p1261_p3 }
  0x1e   :  { %1271 = shalt.err (!%p1268_p7)
}
  0x1f   :  { %50 = dma.hbm_to_vmem [thread:$0]  %s1775_s2, 128, %s48_s30, [#allocation6]  }
  0x20   :  { %s1776_s1 = sld [smem:[#allocation15_spill]] }
  0x26   :  { %s1272_s22 = scalar_lea.hbm %s1776_s1, 256 }
  0x27   :  { %p1273_p8 = scmp.ne.s32.totalorder %s1776_s1, %s1272_s22  ;;  %p1276_p9 = scmp.lt.u32.totalorder %s1272_s22, %s1776_s1 }
  0x29   :  { %p1278_p10 = pnand %p1276_p9, %p1273_p8 }
  0x2b   :  { %1281 = shalt.err (!%p1278_p10)
}
  0x2c   :  { %s1282_s26 = scalar_lea.vmem %s1481_s21, 256  ;;  %p1287_p12 = scmp.lt.s32.totalorder %s1481_s21, %s1481_s21 }
  0x2d   :  { %p1283_p11 = scmp.ne.s32.totalorder %s1481_s21, %s1282_s26  ;;  %p1288_p13 = scmp.lt.s32.totalorder %s1282_s26, %s1282_s26 }
  0x2f   :  { %p1289_p0 = por %p1288_p13, %p1287_p12 }
  0x31   :  { %p1290_p1 = pnand %p1289_p0, %p1283_p11 }
  0x33   :  { %1293 = shalt.err (!%p1290_p1)
}
  0x34   :  { %s1370_s30 = smov 128   ;;  %s1371_s2 = smov 8  }
  0x35   :  { %40 = dma.hbm_to_vmem [thread:$0]  %s1776_s1, 256, %s1481_s21, [#allocation3], %s1370_s30, %s1370_s30, %s1371_s2  }
  0x36   :  { %s1372_s29 = smov [#allocation7]   ;;  %s1294_s24 = scalar_lea.hbm %s1763_s16, 512 }
  0x37   :  { %s84_s0 = sshll.u32 %s1372_s29, 4  ;;  %p1295_p2 = scmp.ne.s32.totalorder %s1763_s16, %s1294_s24  ;;  %s85_s0 = int_to_ptr.vmem [resolvable:$true] %s84_s0 }
  0x38   :  { %p1298_p3 = scmp.lt.u32.totalorder %s1294_s24, %s1763_s16 }
  0x3a   :  { %p1300_p4 = pnand %p1298_p3, %p1295_p2 }
  0x3c   :  { %1303 = shalt.err (!%p1300_p4)
}
  0x3d   :  { %s1304_s19 = scalar_lea.vmem %s85_s0, 512  ;;  %p1309_p6 = scmp.lt.s32.totalorder %s85_s0, %s85_s0 }
  0x3e   :  { %p1305_p5 = scmp.ne.s32.totalorder %s85_s0, %s1304_s19  ;;  %p1310_p7 = scmp.lt.s32.totalorder %s1304_s19, %s1304_s19 }
  0x40   :  { %p1311_p8 = por %p1310_p7, %p1309_p6 }
  0x42   :  { %p1312_p9 = pnand %p1311_p8, %p1305_p5 }
  0x44   :  { %1315 = shalt.err (!%p1312_p9)
}
  0x45   :  { %90 = dma.hbm_to_vmem [thread:$0]  %s1763_s16, 512, %s85_s0, [#allocation6], %s1370_s30, %s1370_s30, %s1371_s2  }
  0x46   :  { %1360 = dma.done.wait [#allocation3], 256  }
  0x47   :  { %1361 = vsyncadd [#allocation3], 4294967040 }
  0x48   :  { %1362 = dma.done.wait [#allocation6], 640  }
  0x49   :  { %1363 = vsyncadd [#allocation6], 4294966656  ;;  %v103_v0 = vld [vmem:[#allocation2] sm:$0xff]  ;;  %v105_v1 = vld [vmem:[#allocation5] sm:$0xff]  ;;  %vm112_vm0 = vcmask 261120   ;;  %v1373_v22 = vmov 0.0  }
  0x4a   :  { %v104_v2 = vld [vmem:[#allocation2 + $0x8] sm:$0xff]  ;;  %v106_v3 = vadd.f32 %v105_v1, %v103_v0  ;;  %v157_v19 = vld [vmem:[%s1751_s4] sm:$0xff]  ;;  %1118 = vmatprep.subr.bf16.mxu0 %v1373_v22  ;;  %v159_v23 = vld [vmem:[%s1751_s4 + $0x10] sm:$0xff]  ;;  %1126 = vmatprep.subr.bf16.mxu1 %v1373_v22  ;;  %vm1374_vm1 = vmmov 0   ;;  %s1777_s22 = sld [smem:[#allocation17_spill]]  ;;  %s1778_s23 = sld [smem:[#allocation18_spill]] }
  0x4b   :  { %v107_v4 = vadd.f32 %v105_v1, %v104_v2  ;;  %v158_v20 = vld [vmem:[%s1751_s4 + $0x8] sm:$0xff]  ;;  %v160_v24 = vld [vmem:[%s1751_s4 + $0x18] sm:$0xff]  ;;  %1122 = vmatprep.mubr.msk.bf16.mxu0 %vm1374_vm1, %v1373_v22  ;;  %1128 = vmatprep.mubr.msk.bf16.mxu1 %vm1374_vm1, %v1373_v22  ;;  %v1063_v43 = vld [vmem:[%s1752_s5] ss:$0 sm:$0xff]  ;;  %s1375_s21 = smov 96   ;;  %s1376_s1 = smov 112  }
  0x4c   :  { %v1524_v5 = vmax.f32 %v106_v3, 0.0  ;;  %v161_v21 = vpack.c.bf16 %v158_v20, %v157_v19  ;;  %v162_v25 = vpack.c.bf16 %v160_v24, %v159_v23  ;;  %vm250_vm2 = vcmask 130048   ;;  %s1377_s5 = smov 64   ;;  %s1378_s4 = smov 16  }
  0x4d   :  { %v1526_v6 = vmax.f32 %v107_v4, 0.0  ;;  %vm464_vm3 = vcmask 1043456   ;;  %v234_v20 = vlaneseq  ;;  %vm460_vm5 = vcmask 64512  }
  0x4e   :  { %v113_v7 = vsel %vm112_vm0, %v1524_v5, 0.0  ;;  %1119 = vmatpush3.bf16.msra.mxu0 %v161_v21  ;;  %vm846_vm6 = vcmask 523264   ;;  %vm960_vm7 = vcmask 1041409   ;;  %vm963_vm8 = vcmask 254976  }
  0x4f   :  { %114 = vadd.xlane.f32.xlu0 %v113_v7  ;;  %v116_v8 = vsel %vm112_vm0, %v1526_v6, 0.0  ;;  %1120 = vmatprep.subr.bf16.mxu0 %v1373_v22  ;;  %v235_v21 = vshrl.u32 %v234_v20, 7  ;;  %v237_v23 = vand.u32 127, %v234_v20 }
  0x50   :  { %v1061_v34 = vld [vmem:[%s1777_s22] ss:$0 sm:$0xff] }
  0x51   :  { %v1062_v38 = vld [vmem:[%s1778_s23] ss:$0 sm:$0xff]  ;;  %vm238_vm4 = vcmp.ge.s32.totalorder %v235_v21, %v237_v23 }
  0x52   :  { %1121 = vmatpush3.bf16.msra.mxu0 %v162_v25 }
  0x53   :  { %117 = vadd.xlane.f32.xlu0 %v116_v8  ;;  %1132 = vmatprep.subr.bf16.mxu0 %v1373_v22 }
  0xdc   :  { %v115_v9 = vpop.xlane.xlu0 %114 }
  0xdd   :  { %v120_v10 = vmul.f32 0.03125, %v115_v9 }
  0xdf   :  { %v122_v11 = vsub.f32 %v1524_v5, %v120_v10 }
  0xe0   :  { %v118_v12 = vpop.xlane.xlu0 %117 }
  0xe1   :  { %v121_v13 = vmul.f32 0.03125, %v118_v12  ;;  %v124_v14 = vmul.f32 %v122_v11, %v122_v11 }
  0xe3   :  { %v123_v15 = vsub.f32 %v1526_v6, %v121_v13  ;;  %v126_v16 = vsel %vm112_vm0, %v124_v14, 0.0 }
  0xe4   :  { %127 = vadd.xlane.f32.xlu1 %v126_v16 }
  0xe5   :  { %v125_v17 = vmul.f32 %v123_v15, %v123_v15 }
  0xe7   :  { %v129_v18 = vsel %vm112_vm0, %v125_v17, 0.0 }
  0xe8   :  { %130 = vadd.xlane.f32.xlu1 %v129_v18 }
 0x171   :  { %v128_v26 = vpop.xlane.xlu1 %127 }
 0x172   :  { %v132_v27 = vmul.f32 0.03125, %v128_v26 }
 0x174   :  { %v134_v28 = vadd.f32 1e-05, %v132_v27 }
 0x175   :  { %v131_v29 = vpop.xlane.xlu1 %130 }
 0x176   :  { %1238 = vrsqrt.f32 %v134_v28  ;;  %v133_v30 = vmul.f32 0.03125, %v131_v29 }
 0x178   :  { %v135_v31 = vadd.f32 1e-05, %v133_v30 }
 0x17a   :  { %1240 = vrsqrt.f32 %v135_v31 }
 0x180   :  { %v1239_v32 = vpop.eup %1238 }
 0x181   :  { %v138_v33 = vmul.f32 %v1239_v32, %v122_v11 }
 0x183   :  { %v146_v37 = vmul.f32 %v1061_v34, %v138_v33 }
 0x184   :  { %v1241_v35 = vpop.eup %1240 }
 0x185   :  { %v139_v36 = vmul.f32 %v1241_v35, %v123_v15  ;;  %v154_v40 = vadd.f32 %v1062_v38, %v146_v37 }
 0x187   :  { %v147_v39 = vmul.f32 %v1061_v34, %v139_v36 }
 0x189   :  { %v155_v41 = vadd.f32 %v1062_v38, %v147_v39 }
 0x18b   :  { %v156_v42 = vpack.c.bf16 %v155_v41, %v154_v40 }
 0x18d   :  { %1123 = vmatmul.mubr.msk.bf16.vlgmr.msra.gmra.mrb[0].mxu0 %vm112_vm0, %v156_v42 }
 0x18e   :  { %1134 = vmatprep.mubr.msk.bf16.mxu0 %vm1374_vm1, %v1373_v22 }
 0x260   :  { %v207_v44 = vpop.f32.mrb[0].mxu0 }
 0x261   :  { %v208_v45 = vadd.f32 %v1063_v43, %v207_v44  ;;  %v1124_v46 = vpop.f32.mrb[1].mxu0 }
 0x262   :  { %v210_v47 = vpop.f32.mrb[2].mxu0 }
 0x263   :  { %v214_v48 = vmax.f32 %v208_v45, 0.0  ;;  %v211_v49 = vadd.f32 %v1063_v43, %v210_v47  ;;  %v1125_v50 = vpop.f32.mrb[3].mxu0 }
 0x265   :  { %v215_v51 = vmax.f32 %v211_v49, 0.0  ;;  %v243_v52 = vpack.c.bf16 %v214_v48, %v214_v48  ;;  %v216_v53 = vmul.f32 0.25, %v214_v48 }
 0x267   :  { %v217_v54 = vmul.f32 0.25, %v215_v51  ;;  %248 = vrot.lane.b32.xlu1 %v243_v52, %s1375_s21  ;;  %v1223_v55 = vpack.i.bf16 %v215_v51, %v214_v48  ;;  %v244_v56 = vpack.c.bf16 %v215_v51, %v215_v51  ;;  %v239_v3 = vpack.c.bf16 %v216_v53, %v216_v53 }
 0x269   :  { %1224 = vrot.lane.b32.xlu0 %v1223_v55, %s1376_s1  ;;  %v1228_v57 = vpack.i.bf16 %v217_v54, %v216_v53  ;;  %v240_v4 = vpack.c.bf16 %v217_v54, %v217_v54 }
 0x26b   :  { %298 = vrot.lane.b32.xlu1 %v244_v56, %s1375_s21 }
 0x2d9   :  { %v249_v58 = vpop.permute.xlu1 %248 }
 0x2da   :  { %v255_v59 = vsel %vm250_vm2, %v249_v58, 0 }
 0x2db   :  { %1127 = vmatpush3.bf16.xpose.msra.mxu1 %v255_v59  ;;  %v1225_v60 = vpop.permute.xlu0 %1224 }
 0x2dc   :  { %v1227_v61 = vunpack.i.h.bf16 %v1225_v60  ;;  %v1226_v62 = vunpack.i.l.bf16 %v1225_v60  ;;  %1138 = vmatprep.subr.bf16.mxu1 %v1373_v22 }
 0x2dd   :  { %v299_v63 = vpop.permute.xlu1 %298 }
 0x2de   :  { %v246_v0 = vpack.c.bf16 %v1227_v61, %v1227_v61  ;;  %v245_v1 = vpack.c.bf16 %v1226_v62, %v1226_v62  ;;  %v304_v2 = vsel %vm250_vm2, %v299_v63, 0 }
 0x2df   :  { %1133 = vmatpush3.bf16.xpose.msra.mxu0 %v304_v2 }
 0x2e0   :  { %396 = vrot.lane.b32.xlu0 %v246_v0, %s1375_s21  ;;  %347 = vrot.lane.b32.xlu1 %v245_v1, %s1375_s21 }
 0x2e1   :  { %1144 = vmatprep.subr.bf16.mxu0 %v1373_v22 }
 0x2e2   :  { %1129 = vmatmul.mubr.msk.bf16.vlgmr.msra.gmra.mrb[0].mxu1 %vm250_vm2, %v239_v3  ;;  %v665_v3 = vld [vmem:[%s1753_s6 + $0x10] sm:$0xff] }
 0x2e3   :  { %1140 = vmatprep.mubr.msk.bf16.mxu1 %vm1374_vm1, %v1373_v22 }
 0x2e4   :  { %458 = vrot.lane.b32.xlu0 %v243_v52, %s1377_s5  ;;  %1229 = vrot.lane.b32.xlu1 %v1228_v57, %s1376_s1  ;;  %v664_v57 = vld [vmem:[%s1753_s6 + $0x8] sm:$0xff] }
 0x2e6   :  { %1135 = vmatmul.mubr.msk.bf16.vlgmr.msra.gmra.mrb[4].mxu0 %vm250_vm2, %v240_v4  ;;  %v666_v4 = vld [vmem:[%s1753_s6 + $0x18] sm:$0xff] }
 0x2e7   :  { %1146 = vmatprep.mubr.msk.bf16.mxu0 %vm1374_vm1, %v1373_v22 }
 0x2e8   :  { %556 = vrot.lane.b32.xlu0 %v245_v1, %s1377_s5  ;;  %508 = vrot.lane.b32.xlu1 %v244_v56, %s1377_s5  ;;  %v663_v56 = vld [vmem:[%s1753_s6] sm:$0xff] }
 0x2e9   :  { %v667_v58 = vpack.c.bf16 %v664_v57, %v663_v56 }
 0x2ec   :  { %604 = vrot.lane.b32.xlu1 %v246_v0, %s1377_s5 }
 0x352   :  { %v397_v7 = vpop.permute.xlu0 %396  ;;  %v348_v8 = vpop.permute.xlu1 %347 }
 0x353   :  { %v402_v9 = vsel %vm250_vm2, %v397_v7, 0  ;;  %v353_v10 = vsel %vm250_vm2, %v348_v8, 0  ;;  %v668_v7 = vpack.c.bf16 %v666_v4, %v665_v3  ;;  %v1076_v3 = vld [vmem:[%s1756_s9] ss:$0 sm:$0xff] }
 0x354   :  { %1139 = vmatpush3.bf16.xpose.msra.mxu1 %v353_v10  ;;  %1145 = vmatpush3.bf16.xpose.msra.mxu0 %v402_v9 }
 0x355   :  { %1150 = vmatprep.subr.bf16.mxu1 %v1373_v22  ;;  %1156 = vmatprep.subr.bf16.mxu0 %v1373_v22 }
 0x356   :  { %v1230_v11 = vpop.permute.xlu1 %1229  ;;  %v459_v14 = vpop.permute.xlu0 %458 }
 0x357   :  { %v1232_v12 = vunpack.i.h.bf16 %v1230_v11  ;;  %v1231_v13 = vunpack.i.l.bf16 %v1230_v11  ;;  %v466_v18 = vsel %vm464_vm3, %v459_v14, 0 }
 0x359   :  { %v242_v15 = vpack.c.bf16 %v1232_v12, %v1232_v12  ;;  %v241_v16 = vpack.c.bf16 %v1231_v13, %v1231_v13 }
 0x35a   :  { %v509_v17 = vpop.permute.xlu1 %508  ;;  %v557_v28 = vpop.permute.xlu0 %556 }
 0x35b   :  { %v514_v19 = vsel %vm464_vm3, %v509_v17, 0  ;;  %1141 = vmatmul.mubr.msk.bf16.vlgmr.msra.gmra.mrb[4].mxu1 %vm250_vm2, %v241_v16  ;;  %1147 = vmatmul.mubr.msk.bf16.vlgmr.msra.gmra.mrb[8].mxu0 %vm250_vm2, %v242_v15  ;;  %v562_v35 = vsel %vm464_vm3, %v557_v28, 0 }
 0x35c   :  { %1151 = vmatpush3.bf16.msra.mxu1 %v466_v18  ;;  %1157 = vmatpush3.bf16.msra.mxu0 %v514_v19 }
 0x35d   :  { %1152 = vmatprep.mubr.msk.bf16.mxu1 %vm1374_vm1, %v1373_v22  ;;  %1162 = vmatprep.subr.bf16.mxu1 %v1373_v22 }
 0x35e   :  { %1158 = vmatprep.mubr.msk.bf16.mxu0 %vm1374_vm1, %v1373_v22  ;;  %1168 = vmatprep.subr.bf16.mxu0 %v1373_v22  ;;  %v605_v37 = vpop.permute.xlu1 %604 }
 0x35f   :  { %v610_v41 = vsel %vm464_vm3, %v605_v37, 0 }
 0x3b5   :  { %v291_v24 = vpop.f32.mrb[0].mxu1 }
 0x3b6   :  { %v444_v25 = vmax.f32 %v291_v24, 0.0  ;;  %v1130_v26 = vpop.f32.mrb[1].mxu1  ;;  %v1073_v24 = vld [vmem:[%s1754_s7] ss:$0 sm:$0xff] }
 0x3b7   :  { %v294_v27 = vpop.f32.mrb[2].mxu1 }
 0x3b8   :  { %v450_v29 = vsel %vm238_vm4, %v444_v25, 0.0  ;;  %v1131_v30 = vpop.f32.mrb[3].mxu1 }
 0x3b9   :  { %v454_v31 = vpack.c.bf16 %v450_v29, %v450_v29  ;;  %v340_v32 = vpop.f32.mrb[4].mxu0 }
 0x3ba   :  { %v445_v33 = vmax.f32 %v340_v32, 0.0  ;;  %v1136_v34 = vpop.f32.mrb[5].mxu0 }
 0x3bb   :  { %v343_v36 = vpop.f32.mrb[6].mxu0  ;;  %1153 = vmatmul.mubr.msk.bf16.vlgmr.msra.gmra.mrb[8].mxu1 %vm460_vm5, %v454_v31 }
 0x3bc   :  { %v451_v38 = vsel %vm238_vm4, %v445_v33, 0.0  ;;  %1163 = vmatpush3.bf16.msra.mxu1 %v562_v35  ;;  %v1137_v39 = vpop.f32.mrb[7].mxu0  ;;  %1164 = vmatprep.mubr.msk.bf16.mxu1 %vm1374_vm1, %v1373_v22 }
 0x3bd   :  { %v455_v40 = vpack.c.bf16 %v451_v38, %v451_v38  ;;  %1174 = vmatprep.subr.bf16.mxu1 %v1373_v22 }
 0x3bf   :  { %1159 = vmatmul.mubr.msk.bf16.vlgmr.msra.gmra.mrb[12].mxu0 %vm460_vm5, %v455_v40 }
 0x3c0   :  { %1169 = vmatpush3.bf16.msra.mxu0 %v610_v41  ;;  %1170 = vmatprep.mubr.msk.bf16.mxu0 %vm1374_vm1, %v1373_v22 }
 0x3c1   :  { %1182 = vmatprep.subr.bf16.mxu0 %v1373_v22 }
 0x42e   :  { %v389_v42 = vpop.f32.mrb[4].mxu1  ;;  %v438_v43 = vpop.f32.mrb[8].mxu0 }
 0x42f   :  { %v446_v44 = vmax.f32 %v389_v42, 0.0  ;;  %v447_v45 = vmax.f32 %v438_v43, 0.0  ;;  %v1142_v46 = vpop.f32.mrb[5].mxu1  ;;  %v1148_v47 = vpop.f32.mrb[9].mxu0  ;;  %v767_v43 = vld [vmem:[%s1757_s10] sm:$0xff] }
 0x430   :  { %v392_v48 = vpop.f32.mrb[6].mxu1  ;;  %v441_v49 = vpop.f32.mrb[10].mxu0  ;;  %v769_v46 = vld [vmem:[%s1757_s10 + $0x10] sm:$0xff]  ;;  %v770_v47 = vld [vmem:[%s1757_s10 + $0x18] sm:$0xff] }
 0x431   :  { %v452_v50 = vsel %vm238_vm4, %v446_v44, 0.0  ;;  %v453_v51 = vsel %vm238_vm4, %v447_v45, 0.0  ;;  %v1143_v52 = vpop.f32.mrb[7].mxu1  ;;  %v1149_v53 = vpop.f32.mrb[11].mxu0  ;;  %v768_v44 = vld [vmem:[%s1757_s10 + $0x8] sm:$0xff]  ;;  %v772_v48 = vpack.c.bf16 %v770_v47, %v769_v46  ;;  %v827_v49 = vld [vmem:[%s1759_s12] sm:$0xff] }
 0x432   :  { %v456_v54 = vpack.c.bf16 %v452_v50, %v452_v50  ;;  %v457_v55 = vpack.c.bf16 %v453_v51, %v453_v51  ;;  %v771_v45 = vpack.c.bf16 %v768_v44, %v767_v43  ;;  %v828_v50 = vld [vmem:[%s1759_s12 + $0x8] sm:$0xff]  ;;  %v829_v51 = vld [vmem:[%s1759_s12 + $0x10] sm:$0xff]  ;;  %v830_v53 = vld [vmem:[%s1759_s12 + $0x18] sm:$0xff] }
 0x433   :  { %v835_v52 = vpack.c.bf16 %v828_v50, %v827_v49  ;;  %v968_v49 = vld [vmem:[#allocation7 + $0x8] sm:$0xff]  ;;  %v969_v50 = vld [vmem:[#allocation7 + $0x10] sm:$0xff] }
 0x434   :  { %1165 = vmatmul.mubr.msk.bf16.vlgmr.msra.gmra.mrb[12].mxu1 %vm460_vm5, %v456_v54  ;;  %1171 = vmatmul.mubr.msk.bf16.vlgmr.msra.gmra.mrb[16].mxu0 %vm460_vm5, %v457_v55  ;;  %v836_v54 = vpack.c.bf16 %v830_v53, %v829_v51 }
 0x435   :  { %1178 = vmatprep.mubr.msk.bf16.mxu1 %vm1374_vm1, %v1373_v22  ;;  %1186 = vmatprep.mubr.msk.bf16.mxu0 %vm1374_vm1, %v1373_v22 }
 0x436   :  { %1175 = vmatpush3.bf16.msra.mxu1 %v667_v58  ;;  %1183 = vmatpush3.bf16.msra.mxu0 %v771_v45 }
 0x437   :  { %1176 = vmatprep.subr.bf16.mxu1 %v1373_v22  ;;  %1184 = vmatprep.subr.bf16.mxu0 %v1373_v22 }
 0x43a   :  { %1177 = vmatpush3.bf16.msra.mxu1 %v668_v7  ;;  %1185 = vmatpush3.bf16.msra.mxu0 %v772_v48  ;;  %v967_v48 = vld [vmem:[#allocation7] sm:$0xff] }
 0x43b   :  { %1190 = vmatprep.subr.bf16.mxu1 %v1373_v22  ;;  %1202 = vmatprep.subr.bf16.mxu0 %v1373_v22  ;;  %v971_v51 = vpack.c.bf16 %v968_v49, %v967_v48 }
 0x48e   :  { %v502_v59 = vpop.f32.mrb[8].mxu1 }
 0x48f   :  { %v1154_v60 = vpop.f32.mrb[9].mxu1 }
 0x490   :  { %v505_v61 = vpop.f32.mrb[10].mxu1 }
 0x491   :  { %v1155_v62 = vpop.f32.mrb[11].mxu1 }
 0x492   :  { %v550_v63 = vpop.f32.mrb[12].mxu0 }
 0x493   :  { %v1160_v0 = vpop.f32.mrb[13].mxu0 }
 0x494   :  { %v553_v1 = vpop.f32.mrb[14].mxu0 }
 0x495   :  { %v1161_v2 = vpop.f32.mrb[15].mxu0 }
 0x507   :  { %v598_v8 = vpop.f32.mrb[12].mxu1  ;;  %v646_v9 = vpop.f32.mrb[16].mxu0 }
 0x508   :  { %v1233_v10 = vpack.i.bf16 %v646_v9, %v598_v8  ;;  %v1166_v11 = vpop.f32.mrb[13].mxu1  ;;  %v1172_v12 = vpop.f32.mrb[17].mxu0 }
 0x509   :  { %v601_v13 = vpop.f32.mrb[14].mxu1  ;;  %v649_v14 = vpop.f32.mrb[18].mxu0  ;;  %v832_v11 = vld [vmem:[%s1759_s12 + $0x28] sm:$0xff] }
 0x50a   :  { %v1167_v15 = vpop.f32.mrb[15].mxu1  ;;  %1234 = vrot.lane.b32.xlu0 %v1233_v10, %s1378_s4  ;;  %v1173_v16 = vpop.f32.mrb[19].mxu0  ;;  %v831_v10 = vld [vmem:[%s1759_s12 + $0x20] sm:$0xff]  ;;  %v833_v13 = vld [vmem:[%s1759_s12 + $0x30] sm:$0xff]  ;;  %v834_v14 = vld [vmem:[%s1759_s12 + $0x38] sm:$0xff] }
 0x50b   :  { %v837_v12 = vpack.c.bf16 %v832_v11, %v831_v10  ;;  %v838_v15 = vpack.c.bf16 %v834_v14, %v833_v13  ;;  %v1077_v16 = vld [vmem:[%s1758_s11] ss:$0 sm:$0xff] }
 0x57c   :  { %v1235_v17 = vpop.permute.xlu0 %1234 }
 0x57d   :  { %v1237_v18 = vunpack.i.h.bf16 %v1235_v17  ;;  %v1236_v19 = vunpack.i.l.bf16 %v1235_v17 }
 0x57f   :  { %v661_v20 = vsel %vm250_vm2, %v550_v63, %v1237_v18  ;;  %v660_v21 = vsel %vm250_vm2, %v502_v59, %v1236_v19  ;;  %v1075_v63 = vld [vmem:[%s1755_s8] ss:$0 sm:$0xff] }
 0x580   :  { %v662_v23 = vpack.c.bf16 %v661_v20, %v660_v21 }
 0x582   :  { %1179 = vmatmul.mubr.msk.bf16.vlgmr.msra.gmra.mrb[16].mxu1 %vm112_vm0, %v662_v23 }
 0x583   :  { %1198 = vmatprep.mubr.msk.bf16.mxu1 %vm1374_vm1, %v1373_v22  ;;  %1191 = vmatpush3.bf16.msra.mxu1 %v835_v52  ;;  %v970_v52 = vld [vmem:[#allocation7 + $0x18] sm:$0xff] }
 0x584   :  { %1192 = vmatprep.subr.bf16.mxu1 %v1373_v22  ;;  %v972_v53 = vpack.c.bf16 %v970_v52, %v969_v50 }
 0x587   :  { %1193 = vmatpush3.bf16.msra.mxu1 %v836_v54 }
 0x588   :  { %1194 = vmatprep.subr.bf16.mxu1 %v1373_v22 }
 0x58b   :  { %1195 = vmatpush3.bf16.msra.mxu1 %v837_v12 }
 0x58c   :  { %1196 = vmatprep.subr.bf16.mxu1 %v1373_v22 }
 0x58f   :  { %1197 = vmatpush3.bf16.msra.mxu1 %v838_v15 }
 0x655   :  { %v713_v25 = vpop.f32.mrb[16].mxu1 }
 0x656   :  { %v714_v26 = vadd.f32 %v1073_v24, %v713_v25  ;;  %v1180_v27 = vpop.f32.mrb[17].mxu1 }
 0x657   :  { %v716_v28 = vpop.f32.mrb[18].mxu1  ;;  %v1079_v27 = vld [vmem:[%s1760_s13] ss:$0 sm:$0xff] }
 0x658   :  { %v1635_v29 = vadd.f32 %v714_v26, %v1524_v5  ;;  %v717_v30 = vadd.f32 %v1073_v24, %v716_v28  ;;  %v1181_v31 = vpop.f32.mrb[19].mxu1 }
 0x65a   :  { %v1638_v32 = vadd.f32 %v717_v30, %v1526_v6  ;;  %v724_v33 = vsel %vm112_vm0, %v1635_v29, 0.0 }
 0x65b   :  { %725 = vadd.xlane.f32.xlu1 %v724_v33 }
 0x65c   :  { %v727_v34 = vsel %vm112_vm0, %v1638_v32, 0.0 }
 0x65d   :  { %728 = vadd.xlane.f32.xlu0 %v727_v34 }
 0x6e8   :  { %v726_v35 = vpop.xlane.xlu1 %725 }
 0x6e9   :  { %v730_v36 = vmul.f32 0.03125, %v726_v35 }
 0x6ea   :  { %v729_v37 = vpop.xlane.xlu0 %728 }
 0x6eb   :  { %v732_v38 = vsub.f32 %v1635_v29, %v730_v36  ;;  %v731_v5 = vmul.f32 0.03125, %v729_v37 }
 0x6ed   :  { %v733_v39 = vsub.f32 %v1638_v32, %v731_v5  ;;  %v734_v40 = vmul.f32 %v732_v38, %v732_v38 }
 0x6ef   :  { %v736_v6 = vsel %vm112_vm0, %v734_v40, 0.0  ;;  %v735_v41 = vmul.f32 %v733_v39, %v733_v39 }
 0x6f0   :  { %737 = vadd.xlane.f32.xlu0 %v736_v6 }
 0x6f1   :  { %v739_v42 = vsel %vm112_vm0, %v735_v41, 0.0 }
 0x6f4   :  { %740 = vadd.xlane.f32.xlu0 %v739_v42 }
 0x77d   :  { %v738_v55 = vpop.xlane.xlu0 %737 }
 0x77e   :  { %v742_v56 = vmul.f32 0.03125, %v738_v55 }
 0x780   :  { %v744_v57 = vadd.f32 1e-05, %v742_v56 }
 0x781   :  { %v741_v58 = vpop.xlane.xlu0 %740 }
 0x782   :  { %1242 = vrsqrt.f32 %v744_v57  ;;  %v743_v59 = vmul.f32 0.03125, %v741_v58 }
 0x784   :  { %v745_v60 = vadd.f32 1e-05, %v743_v59 }
 0x786   :  { %1244 = vrsqrt.f32 %v745_v60 }
 0x78c   :  { %v1243_v61 = vpop.eup %1242 }
 0x78d   :  { %v748_v62 = vmul.f32 %v1243_v61, %v732_v38  ;;  %v1081_v61 = vld [vmem:[%s1761_s14] ss:$0 sm:$0xff]  ;;  %s1379_s14 = smov [#allocation8]  }
 0x78f   :  { %v756_v1 = vmul.f32 %v1075_v63, %v748_v62 }
 0x790   :  { %v1245_v0 = vpop.eup %1244 }
 0x791   :  { %v749_v2 = vmul.f32 %v1245_v0, %v733_v39  ;;  %v764_v7 = vadd.f32 %v1076_v3, %v756_v1 }
 0x793   :  { %v757_v4 = vmul.f32 %v1075_v63, %v749_v2 }
 0x795   :  { %v765_v8 = vadd.f32 %v1076_v3, %v757_v4 }
 0x797   :  { %v766_v9 = vpack.c.bf16 %v765_v8, %v764_v7 }
 0x799   :  { %1187 = vmatmul.mubr.msk.bf16.vlgmr.msra.gmra.mrb[20].mxu0 %vm112_vm0, %v766_v9 }
 0x79a   :  { %1206 = vmatprep.mubr.msk.bf16.mxu0 %vm1374_vm1, %v1373_v22  ;;  %1203 = vmatpush3.bf16.msra.mxu0 %v971_v51 }
 0x79b   :  { %1204 = vmatprep.subr.bf16.mxu0 %v1373_v22  ;;  %v1082_v22 = vld [vmem:[%s1762_s15] ss:$0 sm:$0xff]  ;;  %s1037_s15 = sshll.u32 %s1379_s14, 4  ;;  %s1038_s15 = int_to_ptr.vmem [resolvable:$true] %s1037_s15 }
 0x79c   :  { %s1316_s5 = scalar_lea.vmem %s1038_s15, 32  ;;  %p1321_p11 = scmp.lt.s32.totalorder %s1038_s15, %s1038_s15 }
 0x79d   :  { %p1317_p10 = scmp.ne.s32.totalorder %s1038_s15, %s1316_s5  ;;  %p1322_p12 = scmp.lt.s32.totalorder %s1316_s5, %s1316_s5 }
 0x79e   :  { %1205 = vmatpush3.bf16.msra.mxu0 %v972_v53 }
 0x79f   :  { %p1323_p13 = por %p1322_p12, %p1321_p11 }
 0x7a1   :  { %p1324_p0 = pnand %p1323_p13, %p1317_p10 }
 0x86c   :  { %v817_v17 = vpop.f32.mrb[20].mxu0 }
 0x86d   :  { %v818_v18 = vadd.f32 %v1077_v16, %v817_v17  ;;  %v1188_v19 = vpop.f32.mrb[21].mxu0 }
 0x86e   :  { %v820_v20 = vpop.f32.mrb[22].mxu0 }
 0x86f   :  { %v821_v21 = vadd.f32 %v1077_v16, %v820_v20  ;;  %v1189_v23 = vpop.f32.mrb[23].mxu0  ;;  %v824_v24 = vmax.f32 %v818_v18, 0.0 }
 0x871   :  { %v825_v25 = vmax.f32 %v821_v21, 0.0 }
 0x873   :  { %v826_v26 = vpack.c.bf16 %v825_v25, %v824_v24 }
 0x875   :  { %1199 = vmatmul.mubr.msk.bf16.vlgmr.msra.gmra.mrb[20].mxu1 %vm846_vm6, %v826_v26 }
 0x948   :  { %v884_v28 = vpop.f32.mrb[20].mxu1 }
 0x949   :  { %v885_v30 = vadd.f32 %v1079_v27, %v884_v28  ;;  %v1200_v31 = vpop.f32.mrb[21].mxu1 }
 0x94a   :  { %v887_v33 = vpop.f32.mrb[22].mxu1 }
 0x94b   :  { %v891_v34 = vadd.f32 %v885_v30, %v1635_v29  ;;  %v888_v35 = vadd.f32 %v1079_v27, %v887_v33  ;;  %v1201_v36 = vpop.f32.mrb[23].mxu1 }
 0x94d   :  { %v892_v37 = vadd.f32 %v888_v35, %v1638_v32  ;;  %v893_v38 = vmax.f32 %v891_v34, 0.0 }
 0x94f   :  { %v897_v5 = vsel %vm112_vm0, %v893_v38, 0.0  ;;  %v894_v39 = vmax.f32 %v892_v37, 0.0 }
 0x950   :  { %898 = vadd.xlane.f32.xlu1 %v897_v5 }
 0x951   :  { %v900_v40 = vsel %vm112_vm0, %v894_v39, 0.0 }
 0x952   :  { %901 = vadd.xlane.f32.xlu0 %v900_v40 }
 0x9dd   :  { %v899_v6 = vpop.xlane.xlu1 %898 }
 0x9de   :  { %v903_v41 = vmul.f32 0.03125, %v899_v6 }
 0x9df   :  { %v902_v42 = vpop.xlane.xlu0 %901 }
 0x9e0   :  { %v905_v43 = vsub.f32 %v893_v38, %v903_v41  ;;  %v904_v44 = vmul.f32 0.03125, %v902_v42 }
 0x9e2   :  { %v906_v45 = vsub.f32 %v894_v39, %v904_v44  ;;  %v907_v46 = vmul.f32 %v905_v43, %v905_v43 }
 0x9e4   :  { %v909_v29 = vsel %vm112_vm0, %v907_v46, 0.0  ;;  %v908_v47 = vmul.f32 %v906_v45, %v906_v45 }
 0x9e5   :  { %910 = vadd.xlane.f32.xlu1 %v909_v29 }
 0x9e6   :  { %v912_v32 = vsel %vm112_vm0, %v908_v47, 0.0 }
 0x9e7   :  { %913 = vadd.xlane.f32.xlu0 %v912_v32 }
 0xa72   :  { %v911_v54 = vpop.xlane.xlu1 %910 }
 0xa73   :  { %v915_v55 = vmul.f32 0.03125, %v911_v54 }
 0xa74   :  { %v914_v56 = vpop.xlane.xlu0 %913 }
 0xa75   :  { %v917_v57 = vadd.f32 1e-05, %v915_v55  ;;  %v916_v58 = vmul.f32 0.03125, %v914_v56 }
 0xa77   :  { %1246 = vrsqrt.f32 %v917_v57  ;;  %v918_v59 = vadd.f32 1e-05, %v916_v58 }
 0xa79   :  { %1248 = vrsqrt.f32 %v918_v59 }
 0xa81   :  { %v1247_v60 = vpop.eup %1246 }
 0xa82   :  { %v921_v62 = vmul.f32 %v1247_v60, %v905_v43 }
 0xa83   :  { %v1249_v63 = vpop.eup %1248 }
 0xa84   :  { %v929_v0 = vmul.f32 %v1081_v61, %v921_v62  ;;  %v922_v1 = vmul.f32 %v1249_v63, %v906_v45 }
 0xa86   :  { %v937_v2 = vadd.f32 %v1082_v22, %v929_v0  ;;  %v930_v3 = vmul.f32 %v1081_v61, %v922_v1 }
 0xa88   :  { %v939_v4 = vmax.f32 %v937_v2, 0.0  ;;  %v938_v7 = vadd.f32 %v1082_v22, %v930_v3 }
 0xa8a   :  { %v941_v8 = vsel %vm112_vm0, %v939_v4, 0.0  ;;  %v940_v9 = vmax.f32 %v938_v7, 0.0 }
 0xa8b   :  { %v942_v10 = vrot.slane %v941_v8, 4 }
 0xa8c   :  { %v948_v11 = vsel %vm112_vm0, %v940_v9, 0.0 }
 0xa8d   :  { %v943_v12 = vadd.f32 %v942_v10, %v941_v8  ;;  %v949_v13 = vrot.slane %v948_v11, 4 }
 0xa8f   :  { %v944_v14 = vrot.slane %v943_v12, 2  ;;  %v950_v15 = vadd.f32 %v949_v13, %v948_v11 }
 0xa91   :  { %v945_v16 = vadd.f32 %v944_v14, %v943_v12  ;;  %v951_v17 = vrot.slane %v950_v15, 2 }
 0xa93   :  { %v952_v18 = vadd.f32 %v951_v17, %v950_v15  ;;  %v946_v19 = vrot.slane %v945_v16, 1 }
 0xa95   :  { %v947_v20 = vadd.f32 %v946_v19, %v945_v16  ;;  %v953_v21 = vrot.slane %v952_v18, 1 }
 0xa97   :  { %v954_v23 = vadd.f32 %v953_v21, %v952_v18  ;;  %v956_v24 = vmul.f32 0.125, %v947_v20 }
 0xa99   :  { %v957_v25 = vmul.f32 0.125, %v954_v23  ;;  %v965_v26 = vpack.c.bf16 %v956_v24, %v956_v24 }
 0xa9b   :  { %v966_v27 = vpack.c.bf16 %v957_v25, %v957_v25  ;;  %v961_v28 = vsel %vm960_vm7, %v957_v25, %v956_v24  ;;  %v982_v30 = vunpack.c.l.b16 %v965_v26 }
 0xa9c   :  { %964 = vst.msk [vmem:[#allocation8] sm:$0x3] %vm963_vm8, %v961_v28 }
 0xa9d   :  { %v983_v31 = vunpack.c.l.b16 %v966_v27 }
 0xa9f   :  { %v984_v33 = vsel %vm960_vm7, %v983_v31, %v982_v30 }
 0xaa0   :  { %v985_v34 = vpack.c.b16 %v984_v33, %v984_v33 }
 0xaa2   :  { %1207 = vmatmul.mubr.msk.bf16.vlgmr.msra.gmra.mrb[24].mxu0 %vm112_vm0, %v985_v34 }
 0xaa3   :  { %1327 = shalt.err (!%p1324_p0)
}
 0xaa4   :  { %s1328_s30 = scalar_lea.hbm %s1765_s18, 32 }
 0xaa5   :  { %p1329_p1 = scmp.ne.s32.totalorder %s1765_s18, %s1328_s30  ;;  %p1332_p2 = scmp.lt.u32.totalorder %s1328_s30, %s1765_s18 }
 0xaa7   :  { %p1334_p3 = pnand %p1332_p2, %p1329_p1 }
 0xaa9   :  { %1337 = shalt.err (!%p1334_p3)
}
 0xaaa   :  { %1040 = dma.vmem_to_hbm [thread:$0]  %s1038_s15, 32, %s1765_s18, [#allocation4]   ;;  %v1083_v35 = vld [vmem:[%s1764_s17] ss:$0 sm:$0xff] }
 0xaab   :  { %s1380_s20 = smov [#allocation9]  }
 0xaac   :  { %s1047_s8 = sshll.u32 %s1380_s20, 4  ;;  %s1048_s8 = int_to_ptr.vmem [resolvable:$true] %s1047_s8 }
 0xaad   :  { %s1338_s7 = scalar_lea.vmem %s1048_s8, 32  ;;  %p1343_p5 = scmp.lt.s32.totalorder %s1048_s8, %s1048_s8 }
 0xaae   :  { %p1339_p4 = scmp.ne.s32.totalorder %s1048_s8, %s1338_s7  ;;  %p1344_p6 = scmp.lt.s32.totalorder %s1338_s7, %s1338_s7 }
 0xab0   :  { %p1345_p7 = por %p1344_p6, %p1343_p5 }
 0xab2   :  { %p1346_p8 = pnand %p1345_p7, %p1339_p4 }
 0xb75   :  { %v1023_v36 = vpop.f32.mrb[24].mxu0 }
 0xb76   :  { %v1024_v37 = vadd.f32 %v1083_v35, %v1023_v36  ;;  %v1208_v38 = vpop.f32.mrb[25].mxu0 }
 0xb77   :  { %v1026_v5 = vpop.f32.mrb[26].mxu0 }
 0xb78   :  { %v1029_v39 = vmax.f32 %v1024_v37, 0.0  ;;  %v1209_v40 = vpop.f32.mrb[27].mxu0 }
 0xb7a   :  { %1030 = vst [vmem:[#allocation9] sm:$0x3] %v1029_v39 }
 0xb7b   :  { %1349 = shalt.err (!%p1346_p8)
}
 0xb7c   :  { %s1779_s17 = sld [smem:[#allocation19_spill]] }
 0xb82   :  { %s1350_s22 = scalar_lea.hbm %s1779_s17, 32 }
 0xb83   :  { %p1351_p9 = scmp.ne.s32.totalorder %s1779_s17, %s1350_s22  ;;  %p1354_p10 = scmp.lt.u32.totalorder %s1350_s22, %s1779_s17 }
 0xb85   :  { %p1356_p11 = pnand %p1354_p10, %p1351_p9 }
 0xb87   :  { %1359 = shalt.err (!%p1356_p11)
}
 0xb88   :  { %1050 = dma.vmem_to_hbm [thread:$0]  %s1048_s8, 32, %s1779_s17, [#allocation10]  }
 0xb89   :  { %1364 = dma.done.wait [#allocation4], 32  }
 0xb8a   :  { %1365 = vsyncadd [#allocation4], 4294967264 }
 0xb8b   :  { %1366 = dma.done.wait [#allocation10], 32  }
 0xb8c   :  { %1367 = vsyncadd [#allocation10], 4294967264 }
 0xb8d   :  { %1057 = vsyncpa [#allocation3], 1 }
 0xb8e   :  { %1058 = vsyncpa [#allocation6], 1 }
 0xb8f   :  { %1059 = vsyncpa [#allocation4], 1 }
 0xb90   :  { %1060 = vsyncpa [#allocation10], 1 }

</bundles_post_ra>
